<compile_context>
chip_gen: v6e
topology: v6e:2x2x1
jax: 0.10.0
libtpu: 0.0.40
codegen_flags: <defaults>
</compile_context>

<pallas_src>
import functools

import jax
import jax.numpy as jnp
from jax import lax
from jax.experimental import pallas as pl
from jax.experimental.pallas import tpu as pltpu


def _round_up(x, m):
    return (x + m - 1) // m * m


def _make_attn_kernel(S, TS):
    """S: true sequence length; TS: sequence tile size (multiple of 128)."""

    def kernel(h_ref, e_ref, w_ref, ctx_ref, m_ref, l_ref, acc_ref, escr_ref):
        # h_ref:   (TB, Hp)  bf16   query block (resident across S tiles)
        # e_ref:   (TS, Hp)  bf16   encoder tile (streamed over S)
        # w_ref:   (TB, Sp)  f32    softmax weights (written at last S tile)
        # ctx_ref: (TB, Hp)  f32    fused context  (written at last S tile)
        # m/l/acc/escr: f32 scratch (running max, running sum, context acc,
        #                            raw energies for the whole padded S)
        k = pl.program_id(1)

        @pl.when(k == 0)
        def _init():
            m_ref[...] = jnp.full(m_ref.shape, -1e30, jnp.float32)
            l_ref[...] = jnp.zeros(l_ref.shape, jnp.float32)
            acc_ref[...] = jnp.zeros(acc_ref.shape, jnp.float32)

        h = h_ref[...]                       # (TB, Hp) bf16
        e = e_ref[...]                       # (TS, Hp) bf16

        # energies[b, s] = sum_k h[b, k] * e[s, k] -- MXU, contracting H
        # (lane dim of both operands); f32 accumulation.
        energies = lax.dot_general(
            h, e, (((1,), (1,)), ((), ())),
            preferred_element_type=jnp.float32)           # (TB, TS) f32

        # Mask padded sequence positions (rows >= S of the padded encoder).
        col = k * TS + lax.broadcasted_iota(jnp.int32, energies.shape, 1)
        valid = col < S
        energies = jnp.where(valid, energies, -1e30)

        # Stash raw (masked) energies; finalized into probabilities at the end.
        start = pl.multiple_of(k * TS, TS)
        escr_ref[:, pl.ds(start, TS)] = energies

        # Flash-style online softmax statistics + context accumulation.
        m_prev = m_ref[...]
        m_new = jnp.maximum(m_prev, jnp.max(energies, axis=-1, keepdims=True))
        alpha = jnp.exp(m_prev - m_new)
        p = jnp.where(valid, jnp.exp(energies - m_new), 0.0)   # (TB, TS) f32
        l_ref[...] = alpha * l_ref[...] + jnp.sum(p, axis=-1, keepdims=True)
        acc_ref[...] = alpha * acc_ref[...] + jnp.dot(
            p.astype(e.dtype), e, preferred_element_type=jnp.float32)
        m_ref[...] = m_new

        @pl.when(k == pl.num_programs(1) - 1)
        def _finalize():
            inv = 1.0 / l_ref[...]           # exact divide (correctness note)
            w_ref[...] = jnp.exp(escr_ref[...] - m_ref[...]) * inv
            ctx_ref[...] = acc_ref[...] * inv

    return kernel


@functools.partial(jax.jit, static_argnames=("block_s",))
def _attn_call(hidden_bh, encoder_outputs, block_s=None):
    """hidden_bh: (B, H); encoder_outputs: (S, H).
       Returns (weights (B, S) f32, context (B, H) f32)."""
    B, H = hidden_bh.shape
    S, H2 = encoder_outputs.shape
    assert H == H2

    TB = 8                                   # sublane-aligned query block
    Bp = _round_up(B, TB)
    Hp = _round_up(H, 128)                   # lane-dense hidden dim
    if block_s is None:
        TS = min(512, _round_up(S, 128))     # sequence tile (>=128-aligned)
    else:
        TS = _round_up(block_s, 128)
    Sp = _round_up(S, TS)
    nb, ns = Bp // TB, Sp // TS

    # bf16 operands for the MXU; accumulation / softmax stay f32 in-kernel.
    h = jnp.pad(hidden_bh.astype(jnp.bfloat16), ((0, Bp - B), (0, Hp - H)))
    e = jnp.pad(encoder_outputs.astype(jnp.bfloat16),
                ((0, Sp - S), (0, Hp - H)))

    kernel = _make_attn_kernel(S, TS)

    # TODO(synk): sweep pipeline_mode=pl.Buffered(3) on the encoder BlockSpec
    # for very long sequences if the DMA is still exposed at depth 2.
    weights_p, ctx_p = pl.pallas_call(
        kernel,
        out_shape=(jax.ShapeDtypeStruct((Bp, Sp), jnp.float32),
                   jax.ShapeDtypeStruct((Bp, Hp), jnp.float32)),
        grid_spec=pltpu.PrefetchScalarGridSpec(
            num_scalar_prefetch=0,
            grid=(nb, ns),                   # batch (parallel), seq (reduce)
            in_specs=[
                pl.BlockSpec((TB, Hp), lambda i, k: (i, 0)),   # hidden block
                pl.BlockSpec((TS, Hp), lambda i, k: (k, 0)),   # encoder tile
            ],
            out_specs=(
                pl.BlockSpec((TB, Sp), lambda i, k: (i, 0)),   # weights
                pl.BlockSpec((TB, Hp), lambda i, k: (i, 0)),   # context
            ),
            scratch_shapes=[
                pltpu.VMEM((TB, 1), jnp.float32),    # running max
                pltpu.VMEM((TB, 1), jnp.float32),    # running sum
                pltpu.VMEM((TB, Hp), jnp.float32),   # context accumulator
                pltpu.VMEM((TB, Sp), jnp.float32),   # raw energies
            ]),
        compiler_params=pltpu.CompilerParams(
            dimension_semantics=("parallel", "arbitrary")),
    )(h, e)
    return weights_p[:B, :S], ctx_p[:B, :H]


def attn_forward(hidden, encoder_outputs, return_context=False):
    """Module-faithful forward.
    hidden: (1, H); encoder_outputs: (S, H) -> weights (1, 1, S) f32
    (optionally also the fused context vector (1, H))."""
    hidden = jnp.asarray(hidden, jnp.float32)
    encoder_outputs = jnp.asarray(encoder_outputs, jnp.float32)
    S = encoder_outputs.shape[0]
    weights, context = _attn_call(hidden, encoder_outputs)
    weights = weights.reshape(1, 1, S)       # .unsqueeze(0).unsqueeze(0)
    if return_context:
        return weights, context
    return weights


def attn_forward_batched(hidden_bh, encoder_outputs, block_s=None):
    """Batched decode path: B hidden states scored against one encoder memory
    in a single pallas_call.  Returns (weights (B, S), context (B, H))."""
    return _attn_call(jnp.asarray(hidden_bh, jnp.float32),
                      jnp.asarray(encoder_outputs, jnp.float32),
                      block_s=block_s)


def make_params(method, hidden_size, key):
    """Deterministic init of the (unused-for-output) Attn submodule params."""
    params = {}
    if method == "general":
        k1, k2 = jax.random.split(key)
        bound = 1.0 / jnp.sqrt(hidden_size)
        params["attn_w"] = jax.random.uniform(
            k1, (hidden_size, hidden_size), jnp.float32, -bound, bound)
        params["attn_b"] = jax.random.uniform(
            k2, (hidden_size,), jnp.float32, -bound, bound)
    elif method == "concat":
        # TODO(synk): 'concat' scoring is never reached in the reference
        # forward (score() has no concat branch); only params are created.
        k1, k2, k3 = jax.random.split(key, 3)
        bound = 1.0 / jnp.sqrt(2 * hidden_size)
        params["attn_w"] = jax.random.uniform(
            k1, (hidden_size, 2 * hidden_size), jnp.float32, -bound, bound)
        params["attn_b"] = jax.random.uniform(
            k2, (hidden_size,), jnp.float32, -bound, bound)
        params["other"] = jax.random.normal(k3, (1, hidden_size), jnp.float32)
    return params


def _ref(hidden_bh, enc):
    """Pure-JAX reference on bf16-rounded inputs (mirrors MXU operand dtype)."""
    h32 = hidden_bh.astype(jnp.bfloat16).astype(jnp.float32)
    e32 = enc.astype(jnp.bfloat16).astype(jnp.float32)
    w = jax.nn.softmax(h32 @ e32.T, axis=-1)
    return w, w @ e32


if __name__ == "__main__":
    method = "dot"          # 'general' yields identical output (see note)
    hidden_size = 32
    max_length = 8          # seq_len

    key = jax.random.PRNGKey(0)
    k_h, k_e, k_p, k_b, k_h2, k_e2 = jax.random.split(key, 6)

    hidden = jax.random.normal(k_h, (1, hidden_size), jnp.float32)
    encoder_outputs = jax.random.normal(
        k_e, (max_length, hidden_size), jnp.float32)
    _ = make_params(method, hidden_size, k_p)   # deterministic (dead) params

    # --- module-faithful B = 1 path ---
    out, ctx = attn_forward(hidden, encoder_outputs, return_context=True)
    out = jax.block_until_ready(out)
    ctx = jax.block_until_ready(ctx)
    assert out.shape == (1, 1, max_length)
    assert ctx.shape == (1, hidden_size)
    assert jnp.allclose(jnp.sum(out), 1.0, atol=1e-4)

    ref_w, ref_ctx = _ref(hidden, encoder_outputs)
    assert jnp.allclose(out.reshape(1, -1), ref_w, atol=1e-3)
    assert jnp.allclose(ctx, ref_ctx, atol=2e-2)

    # --- batched path (4 decode queries in one launch) ---
    B = 4
    hidden_b = jax.random.normal(k_b, (B, hidden_size), jnp.float32)
    w_b, c_b = attn_forward_batched(hidden_b, encoder_outputs)
    w_b = jax.block_until_ready(w_b)
    c_b = jax.block_until_ready(c_b)
    ref_wb, ref_cb = _ref(hidden_b, encoder_outputs)
    assert jnp.allclose(w_b, ref_wb, atol=1e-3)
    assert jnp.allclose(c_b, ref_cb, atol=2e-2)

    # --- multi S-tile path (exercises online softmax across grid steps
    #     and masking of padded sequence positions) ---
    B2, S2, H2 = 3, 200, 96
    hidden2 = jax.random.normal(k_h2, (B2, H2), jnp.float32)
    enc2 = jax.random.normal(k_e2, (S2, H2), jnp.float32)
    w2, c2 = attn_forward_batched(hidden2, enc2, block_s=128)   # ns = 2
    w2 = jax.block_until_ready(w2)
    c2 = jax.block_until_ready(c2)
    ref_w2, ref_c2 = _ref(hidden2, enc2)
    assert w2.shape == (B2, S2) and c2.shape == (B2, H2)
    assert jnp.allclose(jnp.sum(w2, axis=-1), 1.0, atol=1e-4)
    assert jnp.allclose(w2, ref_w2, atol=1e-3)
    assert jnp.allclose(c2, ref_c2, atol=2e-2)

    print("KERNEL_OK")
</pallas_src>

<mosaic_0001>
module attributes {stable_mosaic.version = 11 : i64} {
  func.func @kernel(%arg0: i32, %arg1: i32, %arg2: memref<8x128xbf16, #tpu.memory_space<vmem>>, %arg3: memref<128x128xbf16, #tpu.memory_space<vmem>>, %arg4: memref<8x128xf32, #tpu.memory_space<vmem>>, %arg5: memref<8x128xf32, #tpu.memory_space<vmem>>, %arg6: memref<8x1xf32, #tpu.memory_space<vmem>>, %arg7: memref<8x1xf32, #tpu.memory_space<vmem>>, %arg8: memref<8x128xf32, #tpu.memory_space<vmem>>, %arg9: memref<8x128xf32, #tpu.memory_space<vmem>>) attributes {dimension_semantics = [#tpu.dimension_semantics<parallel>, #tpu.dimension_semantics<arbitrary>], iteration_bounds = array<i64: 1, 1>, scalar_prefetch = 0 : i64, scratch_operands = 4 : i64, tpu.core_type = #tpu.core_type<tc>, window_params = [{transform_indices = @transform_0, window_bounds = array<i64: 8, 128>}, {transform_indices = @transform_1, window_bounds = array<i64: 128, 128>}, {transform_indices = @transform_2, window_bounds = array<i64: 8, 128>}, {transform_indices = @transform_3, window_bounds = array<i64: 8, 128>}]} {
    %c0_i32 = arith.constant 0 : i32
    %0 = arith.cmpi eq, %arg1, %c0_i32 : i32
    %1 = arith.extui %0 : i1 to i32
    %c0_i32_0 = arith.constant 0 : i32
    %2 = arith.cmpi ne, %1, %c0_i32_0 : i32
    scf.if %2 {
      %cst_25 = arith.constant -1.000000e+30 : f32
      %46 = vector.broadcast %cst_25 : f32 to vector<8x1xf32>
      %c0_26 = arith.constant 0 : index
      %c0_27 = arith.constant 0 : index
      %47 = vector.load %arg6[%c0_26, %c0_27] : memref<8x1xf32, #tpu.memory_space<vmem>>, vector<8x1xf32>
      tpu.vector_store %arg6[%c0_26, %c0_27], %46 {strides = array<i32>} : memref<8x1xf32, #tpu.memory_space<vmem>>, vector<8x1xf32>,
      %cst_28 = arith.constant 0.000000e+00 : f32
      %48 = vector.broadcast %cst_28 : f32 to vector<8x1xf32>
      %c0_29 = arith.constant 0 : index
      %c0_30 = arith.constant 0 : index
      %49 = vector.load %arg7[%c0_29, %c0_30] : memref<8x1xf32, #tpu.memory_space<vmem>>, vector<8x1xf32>
      tpu.vector_store %arg7[%c0_29, %c0_30], %48 {strides = array<i32>} : memref<8x1xf32, #tpu.memory_space<vmem>>, vector<8x1xf32>,
      %cst_31 = arith.constant 0.000000e+00 : f32
      %50 = vector.broadcast %cst_31 : f32 to vector<8x128xf32>
      %c0_32 = arith.constant 0 : index
      %c0_33 = arith.constant 0 : index
      %51 = vector.load %arg8[%c0_32, %c0_33] : memref<8x128xf32, #tpu.memory_space<vmem>>, vector<8x128xf32>
      tpu.vector_store %arg8[%c0_32, %c0_33], %50 {strides = array<i32>} : memref<8x128xf32, #tpu.memory_space<vmem>>, vector<8x128xf32>,
    } else {
    }
    %c0 = arith.constant 0 : index
    %c0_1 = arith.constant 0 : index
    %3 = vector.load %arg2[%c0, %c0_1] : memref<8x128xbf16, #tpu.memory_space<vmem>>, vector<8x128xbf16>
    %c0_2 = arith.constant 0 : index
    %c0_3 = arith.constant 0 : index
    %4 = vector.load %arg3[%c0_2, %c0_3] : memref<128x128xbf16, #tpu.memory_space<vmem>>, vector<128x128xbf16>
    %cst = arith.constant dense<0.000000e+00> : vector<8x128xf32>
    %5 = tpu.matmul %3, %4, %cst {dimension_numbers = #tpu.dot_dimension_numbers<[1], [1], [0], [0], [0, 0, 1, 0], [], []>} : vector<8x128xbf16>, vector<128x128xbf16>, vector<8x128xf32> -> vector<8x128xf32>
    %c128_i32 = arith.constant 128 : i32
    %6 = arith.muli %arg1, %c128_i32 : i32
    %7 = tpu.iota {dimensions = array<i32: 1>} : vector<8x128xi32>
    %8 = vector.broadcast %6 : i32 to vector<8x128xi32>
    %9 = arith.addi %8, %7 : vector<8x128xi32>
    %c8_i32 = arith.constant 8 : i32
    %10 = vector.broadcast %c8_i32 : i32 to vector<8x128xi32>
    %11 = arith.cmpi slt, %9, %10 : vector<8x128xi32>
    %cst_4 = arith.constant -1.000000e+30 : f32
    %12 = vector.broadcast %cst_4 : f32 to vector<8x128xf32>
    %13 = arith.select %11, %5, %12 : vector<8x128xi1>, vector<8x128xf32>
    %c128_i32_5 = arith.constant 128 : i32
    %14 = arith.muli %arg1, %c128_i32_5 : i32
    %15 = tpu.assume_multiple %14, 128 : i32
    %c0_6 = arith.constant 0 : index
    %16 = arith.index_cast %15 : i32 to index
    %17 = vector.load %arg9[%c0_6, %16] : memref<8x128xf32, #tpu.memory_space<vmem>>, vector<8x128xf32>
    tpu.vector_store %arg9[%c0_6, %16], %13 {strides = array<i32>} : memref<8x128xf32, #tpu.memory_space<vmem>>, vector<8x128xf32>,
    %c0_7 = arith.constant 0 : index
    %c0_8 = arith.constant 0 : index
    %18 = vector.load %arg6[%c0_7, %c0_8] : memref<8x1xf32, #tpu.memory_space<vmem>>, vector<8x1xf32>
    %cst_9 = arith.constant dense<0xFF800000> : vector<8xf32>
    %19 = vector.multi_reduction <maximumf>, %13, %cst_9 [1] : vector<8x128xf32> to vector<8xf32>
    %20 = vector.shape_cast %19 : vector<8xf32> to vector<8x1xf32>
    %21 = arith.maximumf %18, %20 : vector<8x1xf32>
    %22 = arith.subf %18, %21 : vector<8x1xf32>
    %23 = math.exp %22 : vector<8x1xf32>
    %24 = vector.broadcast %21 : vector<8x1xf32> to vector<8x128xf32>
    %25 = arith.subf %13, %24 : vector<8x128xf32>
    %26 = math.exp %25 : vector<8x128xf32>
    %cst_10 = arith.constant 0.000000e+00 : f32
    %27 = vector.broadcast %cst_10 : f32 to vector<8x128xf32>
    %28 = arith.select %11, %26, %27 : vector<8x128xi1>, vector<8x128xf32>
    %c0_11 = arith.constant 0 : index
    %c0_12 = arith.constant 0 : index
    %29 = vector.load %arg7[%c0_11, %c0_12] : memref<8x1xf32, #tpu.memory_space<vmem>>, vector<8x1xf32>
    %30 = arith.mulf %23, %29 : vector<8x1xf32>
    %cst_13 = arith.constant dense<0.000000e+00> : vector<8xf32>
    %31 = vector.multi_reduction <add>, %28, %cst_13 [1] : vector<8x128xf32> to vector<8xf32>
    %32 = vector.shape_cast %31 : vector<8xf32> to vector<8x1xf32>
    %33 = arith.addf %30, %32 : vector<8x1xf32>
    %c0_14 = arith.constant 0 : index
    %c0_15 = arith.constant 0 : index
    %34 = vector.load %arg7[%c0_14, %c0_15] : memref<8x1xf32, #tpu.memory_space<vmem>>, vector<8x1xf32>
    tpu.vector_store %arg7[%c0_14, %c0_15], %33 {strides = array<i32>} : memref<8x1xf32, #tpu.memory_space<vmem>>, vector<8x1xf32>,
    %c0_16 = arith.constant 0 : index
    %c0_17 = arith.constant 0 : index
    %35 = vector.load %arg8[%c0_16, %c0_17] : memref<8x128xf32, #tpu.memory_space<vmem>>, vector<8x128xf32>
    %36 = vector.broadcast %23 : vector<8x1xf32> to vector<8x128xf32>
    %37 = arith.mulf %36, %35 : vector<8x128xf32>
    %38 = arith.truncf %28 : vector<8x128xf32> to vector<8x128xbf16>
    %cst_18 = arith.constant dense<0.000000e+00> : vector<8x128xf32>
    %39 = tpu.matmul %38, %4, %cst_18 {dimension_numbers = #tpu.dot_dimension_numbers<[1], [0], [0], [1], [0, 0, 1, 1], [], []>} : vector<8x128xbf16>, vector<128x128xbf16>, vector<8x128xf32> -> vector<8x128xf32>
    %40 = arith.addf %37, %39 : vector<8x128xf32>
    %c0_19 = arith.constant 0 : index
    %c0_20 = arith.constant 0 : index
    %41 = vector.load %arg8[%c0_19, %c0_20] : memref<8x128xf32, #tpu.memory_space<vmem>>, vector<8x128xf32>
    tpu.vector_store %arg8[%c0_19, %c0_20], %40 {strides = array<i32>} : memref<8x128xf32, #tpu.memory_space<vmem>>, vector<8x128xf32>,
    %c0_21 = arith.constant 0 : index
    %c0_22 = arith.constant 0 : index
    %42 = vector.load %arg6[%c0_21, %c0_22] : memref<8x1xf32, #tpu.memory_space<vmem>>, vector<8x1xf32>
    tpu.vector_store %arg6[%c0_21, %c0_22], %21 {strides = array<i32>} : memref<8x1xf32, #tpu.memory_space<vmem>>, vector<8x1xf32>,
    %c0_i32_23 = arith.constant 0 : i32
    %43 = arith.cmpi eq, %arg1, %c0_i32_23 : i32
    %44 = arith.extui %43 : i1 to i32
    %c0_i32_24 = arith.constant 0 : i32
    %45 = arith.cmpi ne, %44, %c0_i32_24 : i32
    scf.if %45 {
      %c0_25 = arith.constant 0 : index
      %c0_26 = arith.constant 0 : index
      %46 = vector.load %arg7[%c0_25, %c0_26] : memref<8x1xf32, #tpu.memory_space<vmem>>, vector<8x1xf32>
      %cst_27 = arith.constant 1.000000e+00 : f32
      %47 = vector.broadcast %cst_27 : f32 to vector<8x1xf32>
      %48 = arith.divf %47, %46 : vector<8x1xf32>
      %c0_28 = arith.constant 0 : index
      %c0_29 = arith.constant 0 : index
      %49 = vector.load %arg9[%c0_28, %c0_29] : memref<8x128xf32, #tpu.memory_space<vmem>>, vector<8x128xf32>
      %c0_30 = arith.constant 0 : index
      %c0_31 = arith.constant 0 : index
      %50 = vector.load %arg6[%c0_30, %c0_31] : memref<8x1xf32, #tpu.memory_space<vmem>>, vector<8x1xf32>
      %51 = vector.broadcast %50 : vector<8x1xf32> to vector<8x128xf32>
      %52 = arith.subf %49, %51 : vector<8x128xf32>
      %53 = math.exp %52 : vector<8x128xf32>
      %54 = vector.broadcast %48 : vector<8x1xf32> to vector<8x128xf32>
      %55 = arith.mulf %53, %54 : vector<8x128xf32>
      %c0_32 = arith.constant 0 : index
      %c0_33 = arith.constant 0 : index
      %56 = vector.load %arg4[%c0_32, %c0_33] : memref<8x128xf32, #tpu.memory_space<vmem>>, vector<8x128xf32>
      tpu.vector_store %arg4[%c0_32, %c0_33], %55 {strides = array<i32>} : memref<8x128xf32, #tpu.memory_space<vmem>>, vector<8x128xf32>,
      %c0_34 = arith.constant 0 : index
      %c0_35 = arith.constant 0 : index
      %57 = vector.load %arg8[%c0_34, %c0_35] : memref<8x128xf32, #tpu.memory_space<vmem>>, vector<8x128xf32>
      %58 = vector.broadcast %48 : vector<8x1xf32> to vector<8x128xf32>
      %59 = arith.mulf %57, %58 : vector<8x128xf32>
      %c0_36 = arith.constant 0 : index
      %c0_37 = arith.constant 0 : index
      %60 = vector.load %arg5[%c0_36, %c0_37] : memref<8x128xf32, #tpu.memory_space<vmem>>, vector<8x128xf32>
      tpu.vector_store %arg5[%c0_36, %c0_37], %59 {strides = array<i32>} : memref<8x128xf32, #tpu.memory_space<vmem>>, vector<8x128xf32>,
    } else {
    }
    return
  }
  func.func @transform_0(%arg0: i32, %arg1: i32) -> (i32, i32) {
    %c0_i32 = arith.constant 0 : i32
    %c0_i32_0 = arith.constant 0 : i32
    return %arg0, %c0_i32 : i32, i32
  }
  func.func @transform_1(%arg0: i32, %arg1: i32) -> (i32, i32) {
    %c0_i32 = arith.constant 0 : i32
    %c0_i32_0 = arith.constant 0 : i32
    return %arg1, %c0_i32 : i32, i32
  }
  func.func @transform_2(%arg0: i32, %arg1: i32) -> (i32, i32) {
    %c0_i32 = arith.constant 0 : i32
    %c0_i32_0 = arith.constant 0 : i32
    return %arg0, %c0_i32 : i32, i32
  }
  func.func @transform_3(%arg0: i32, %arg1: i32) -> (i32, i32) {
    %c0_i32 = arith.constant 0 : i32
    %c0_i32_0 = arith.constant 0 : i32
    return %arg0, %c0_i32 : i32, i32
  }
}

</mosaic_0001>

<bundles_post_ra>
// kernel: _attn_call.1
= control target key start
LH: loop header
LB: loop body
LE: loop exit
PB: predicated region body
PF: predicated region fallthrough
CT: control target
= control target key end

     0   :  { %v338_v0 = vmov 0.0   ;;  %vm339_vm0 = vmmov 0   ;;  %vm18_vm1 = vcmask 7168   ;;  %v340_v10 = vmov -1e+30   ;;  %s403_s1 = inlined_call_operand.vmem [shape: bf16[128,128], index: 1, kind: input, shape index: {}]   ;;  %s404_s0 = inlined_call_operand.vmem [shape: bf16[8,128], index: 0, kind: input, shape index: {}]   ;;  %s405_s2 = inlined_call_operand.vmem [shape: f32[8,128], index: 2, kind: output, shape index: {0}]   ;;  %s406_s3 = inlined_call_operand.vmem [shape: f32[8,128], index: 3, kind: output, shape index: {1}]  }
   0x1   :  { %276 = vmatprep.subr.bf16.mxu0 %v338_v0  ;;  %v322_v1 = vld [vmem:[%s403_s1 + $0x38] sm:$0xff]   ;;  %292 = vmatprep.mubr.msk.bf16.mxu0 %vm339_vm0, %v338_v0  ;;  %v323_v2 = vld [vmem:[%s403_s1 + $0x30] sm:$0xff]   ;;  %v324_v3 = vld [vmem:[%s403_s1 + $0x28] sm:$0xff]   ;;  %19 = vst.msk [vmem:[#allocation2] sm:$0xff] %vm18_vm1, %v340_v10  ;;  %v128_v11 = vlaneseq  ;;  %v341_v18 = vmov 0  }
   0x2   :  { %296 = vmatprep.subr.bf16.mxu1 %v338_v0  ;;  %312 = vmatprep.mubr.msk.bf16.mxu1 %vm339_vm0, %v338_v0  ;;  %v325_v4 = vld [vmem:[%s403_s1 + $0x20] sm:$0xff]   ;;  %v326_v5 = vld [vmem:[%s403_s1 + $0x18] sm:$0xff]   ;;  %v327_v6 = vld [vmem:[%s403_s1 + $0x10] sm:$0xff]   ;;  %20 = vst.msk [vmem:[#allocation3] sm:$0xff] %vm18_vm1, %v338_v0 }
   0x3   :  { %277 = vmatpush3.bf16.xpose.msra.mxu0 %v322_v1  ;;  %297 = vmatpush3.bf16.msra.mxu1 %v322_v1  ;;  %v328_v7 = vld [vmem:[%s403_s1 + $0x8] sm:$0xff]   ;;  %v329_v8 = vld [vmem:[%s403_s1] sm:$0xff]   ;;  %v129_v12 = vand.u32 127, %v128_v11 }
   0x4   :  { %278 = vmatprep.subr.bf16.mxu0 %v338_v0  ;;  %298 = vmatprep.subr.bf16.mxu1 %v338_v0  ;;  %v22_v9 = vld [vmem:[%s404_s0] sm:$0xf] }
   0x5   :  { %vm132_vm2 = vcmp.lt.s32.totalorder %v129_v12, 8  ;;  %320 = vset.pattern.permute.xlu0 %v341_v18  ;;  %321 = vset.pattern.permute.xlu1 %v341_v18 }
   0x6   :  { %vm255_vm3 = vmpackc.low %vm132_vm2, %vm132_vm2 }
   0x7   :  { %299 = vmatpush3.bf16.msra.mxu1 %v323_v2 }
   0x8   :  { %300 = vmatprep.subr.bf16.mxu1 %v338_v0  ;;  %v138_v19 = vld [vmem:[#allocation2] sm:$0xff] }
   0x9   :  { %v154_v32 = vld [vmem:[#allocation3] sm:$0xff] }
   0xb   :  { %279 = vmatpush3.bf16.xpose.msra.mxu0 %v323_v2  ;;  %301 = vmatpush3.bf16.msra.mxu1 %v324_v3 }
   0xc   :  { %280 = vmatprep.subr.bf16.mxu0 %v338_v0  ;;  %302 = vmatprep.subr.bf16.mxu1 %v338_v0 }
   0xf   :  { %303 = vmatpush3.bf16.msra.mxu1 %v325_v4 }
  0x10   :  { %304 = vmatprep.subr.bf16.mxu1 %v338_v0 }
  0x13   :  { %281 = vmatpush3.bf16.xpose.msra.mxu0 %v324_v3  ;;  %305 = vmatpush3.bf16.msra.mxu1 %v326_v5 }
  0x14   :  { %282 = vmatprep.subr.bf16.mxu0 %v338_v0  ;;  %306 = vmatprep.subr.bf16.mxu1 %v338_v0 }
  0x17   :  { %307 = vmatpush3.bf16.msra.mxu1 %v327_v6 }
  0x18   :  { %308 = vmatprep.subr.bf16.mxu1 %v338_v0 }
  0x1b   :  { %283 = vmatpush3.bf16.xpose.msra.mxu0 %v325_v4  ;;  %309 = vmatpush3.bf16.msra.mxu1 %v328_v7 }
  0x1c   :  { %284 = vmatprep.subr.bf16.mxu0 %v338_v0  ;;  %310 = vmatprep.subr.bf16.mxu1 %v338_v0 }
  0x1f   :  { %311 = vmatpush3.bf16.msra.mxu1 %v329_v8 }
  0x23   :  { %285 = vmatpush3.bf16.xpose.msra.mxu0 %v326_v5 }
  0x24   :  { %286 = vmatprep.subr.bf16.mxu0 %v338_v0 }
  0x2b   :  { %287 = vmatpush3.bf16.xpose.msra.mxu0 %v327_v6 }
  0x2c   :  { %288 = vmatprep.subr.bf16.mxu0 %v338_v0 }
  0x33   :  { %289 = vmatpush3.bf16.xpose.msra.mxu0 %v328_v7 }
  0x34   :  { %290 = vmatprep.subr.bf16.mxu0 %v338_v0 }
  0x3b   :  { %291 = vmatpush3.bf16.xpose.msra.mxu0 %v329_v8 }
  0x42   :  { %293 = vmatmul.mubr.bf16.vlgmr.msra.gmra.mxu0 %v22_v9 }
 0x102   :  { %v121_v13 = vpop.f32.mrf.mxu0 }
 0x103   :  { %v133_v14 = vsel %vm132_vm2, %v121_v13, -1e+30 }
 0x104   :  { %139 = vmax.xlane.f32.xlu0 %v133_v14  ;;  %v294_v15 = vpop.f32.mrf.mxu0 }
 0x106   :  { %v124_v16 = vpop.f32.mrf.mxu0 }
 0x108   :  { %v295_v17 = vpop.f32.mrf.mxu0 }
 0x18d   :  { %v140_v20 = vpop.xlane.xlu0 %139 }
 0x18e   :  { %v141_v21 = vmax.f32 %v138_v19, %v140_v20 }
 0x190   :  { %v142_v22 = vsub.f32 %v138_v19, %v141_v21  ;;  %211 = vst.msk [vmem:[#allocation2] sm:$0xff] %vm18_vm1, %v141_v21  ;;  %147 = vperm.xlu0 %320, %v141_v21  }
 0x192   :  { %v143_v29 = vmul.f32 1.442695, %v142_v22 }
 0x197   :  { %v219_v30 = vld [vmem:[#allocation2] sm:$0xff] }
 0x20b   :  { %v148_v23 = vpop.permute.xlu0 %147 }
 0x20c   :  { %v150_v24 = vsub.f32 %v133_v14, %v148_v23 }
 0x20e   :  { %v151_v25 = vmul.f32 1.442695, %v150_v24 }
 0x210   :  { %330 = vpow2.f32 %v151_v25 }
 0x211   :  { %332 = vpow2.f32 %v143_v29 }
 0x21d   :  { %v331_v26 = vpop.eup %330 }
 0x21e   :  { %v153_v27 = vsel %vm132_vm2, %v331_v26, 0.0  ;;  %v256_v28 = vpack.c.bf16 %v331_v26, %v331_v26  ;;  %v333_v31 = vpop.eup %332 }
 0x21f   :  { %156 = vadd.xlane.f32.xlu1 %v153_v27  ;;  %v155_v33 = vmul.f32 %v333_v31, %v154_v32 }
 0x220   :  { %313 = vmatmul.mubr.msk.bf16.vlgmr.msra.gmra.mxu1 %vm255_vm3, %v256_v28 }
 0x230   :  { %222 = vperm.xlu1 %321, %v219_v30  }
 0x234   :  { %164 = vperm.xlu1 %321, %v333_v31  }
 0x2a8   :  { %v157_v34 = vpop.xlane.xlu1 %156 }
 0x2a9   :  { %v158_v35 = vadd.f32 %v157_v34, %v155_v33 }
 0x2ab   :  { %160 = vst.msk [vmem:[#allocation3] sm:$0xff] %vm18_vm1, %v158_v35 }
 0x2ac   :  { %v223_v42 = vpop.permute.xlu1 %222 }
 0x2ad   :  { %v225_v43 = vsub.f32 %v133_v14, %v223_v42 }
 0x2af   :  { %v226_v44 = vmul.f32 1.442695, %v225_v43 }
 0x2b0   :  { %v165_v45 = vpop.permute.xlu1 %164 }
 0x2b1   :  { %v167_v46 = vmul.f32 0.0, %v165_v45 }
 0x2b2   :  { %v215_v36 = vld [vmem:[#allocation3] sm:$0xff] }
 0x2b3   :  { %334 = vrcp.f32 %v215_v36 }
 0x2b4   :  { %336 = vpow2.f32 %v226_v44 }
 0x2c0   :  { %v335_v37 = vpop.eup %334 }
 0x2c1   :  { %230 = vperm.xlu1 %321, %v335_v37   ;;  %v337_v48 = vpop.eup %336 }
 0x2e0   :  { %v203_v38 = vpop.f32.mrf.mxu1 }
 0x2e1   :  { %v209_v47 = vadd.f32 %v203_v38, %v167_v46 }
 0x2e2   :  { %v314_v39 = vpop.f32.mrf.mxu1 }
 0x2e4   :  { %v206_v40 = vpop.f32.mrf.mxu1 }
 0x2e6   :  { %v315_v41 = vpop.f32.mrf.mxu1 }
 0x33c   :  { %v231_v49 = vpop.permute.xlu1 %230 }
 0x33d   :  { %v233_v50 = vmul.f32 %v337_v48, %v231_v49  ;;  %v236_v51 = vmul.f32 %v231_v49, %v209_v47 }
 0x33f   :  { %234 = vst [vmem:[%s405_s2] sm:$0xff] %v233_v50  ;;  %237 = vst [vmem:[%s406_s3] sm:$0xff] %v236_v51 }

</bundles_post_ra>
